<compile_context>
chip_gen: v7x
topology: tpu7x:2x2x1
jax: 0.10.0
libtpu: 0.0.40
codegen_flags: <defaults>
</compile_context>

<pallas_src>
import jax
import jax.numpy as jnp
from jax.experimental import pallas as pl
from jax.experimental.pallas import tpu as pltpu

EPS = 1e-5  # PyTorch BatchNorm1d default eps


def _round_up(n, m):
    return ((n + m - 1) // m) * m


def _pad2(a, rows, cols):
    r, c = a.shape
    return jnp.zeros((rows, cols), a.dtype).at[:r, :c].set(a)


def _pick_tile_b(B):
    """Largest lane/sublane-friendly batch tile with minimal padding waste."""
    if B < 128:
        return _round_up(max(B, 1), 8)
    for t in (1024, 512, 256, 128):
        if B % t == 0:
            return t
    return 128


# ----------------------------- fused kernel ----------------------------------

def fused_resnet_kernel(x_ref, win_ref, bin_ref, w1_ref, b1_ref,
                        w2_ref, b2_ref, hscale_ref, hshift_ref,
                        wo_ref, bo_ref, o_ref):
    # x_ref:  (TILE_B, FP)         padded features for this batch tile
    # win_ref:(FP, DP)  bin_ref:(1, DP)        input linear (pre-transposed)
    # w1_ref: (L, DP, DHP)  b1_ref:(L, 1, DHP) per-block Linear1 (BN folded in)
    # w2_ref: (L, DHP, DP)  b2_ref:(L, 1, DP)  per-block Linear2
    # hscale/hshift: (1, DP)                   head BN as fused scale+shift
    # wo_ref: (DP, OUT_P)   bo_ref:(1, OUT_P)  head linear (lane-padded output)
    x = (jnp.dot(x_ref[...], win_ref[...], preferred_element_type=jnp.float32)
         + bin_ref[...])

    n_layers = w1_ref.shape[0]  # static -> unrolled Python loop (LLO visibility)
    for i in range(n_layers):
        # Block BN already folded into w1/b1 at prep time.
        h = jnp.dot(x, w1_ref[i], preferred_element_type=jnp.float32) + b1_ref[i]
        h = jnp.maximum(h, 0.0)
        # TODO(synk): hidden_dropout / residual_dropout are identity (eval mode).
        y = jnp.dot(h, w2_ref[i], preferred_element_type=jnp.float32) + b2_ref[i]
        x = x + y

    # Output head: BN -> ReLU -> Linear (BN cannot be folded across the ReLU).
    xn = x * hscale_ref[...] + hshift_ref[...]
    h = jnp.maximum(xn, 0.0)
    o_ref[...] = (jnp.dot(h, wo_ref[...], preferred_element_type=jnp.float32)
                  + bo_ref[...])


# ----------------------------- wrapper ----------------------------------------

def resnet_forward(params, x_num, x_cat):
    p = params
    # SimpleTabularEmbedding: per-categorical embedding lookup + concat (glue).
    embs = [tbl[x_cat[:, i]] for i, tbl in enumerate(p["emb_tables"])]
    x = jnp.concatenate([x_num] + embs, axis=-1).astype(jnp.float32)
    B, f_in = x.shape

    FP, DP = p["win"].shape
    L, _, DHP = p["w1"].shape
    OUT_P = p["wo"].shape[1]
    out_features = p["out_features"]

    TILE_B = _pick_tile_b(B)
    B_pad = _round_up(B, TILE_B)
    xp = jnp.zeros((B_pad, FP), jnp.float32).at[:B, :f_in].set(x)

    nb = B_pad // TILE_B
    const2 = lambda i: (0, 0)
    const3 = lambda i: (0, 0, 0)

    out = pl.pallas_call(
        fused_resnet_kernel,
        out_shape=jax.ShapeDtypeStruct((B_pad, OUT_P), jnp.float32),
        grid=(nb,),
        in_specs=[
            pl.BlockSpec((TILE_B, FP), lambda i: (i, 0)),   # activations: tiled over batch
            pl.BlockSpec((FP, DP), const2),                 # weights: VMEM-resident
            pl.BlockSpec((1, DP), const2),
            pl.BlockSpec((L, DP, DHP), const3),
            pl.BlockSpec((L, 1, DHP), const3),
            pl.BlockSpec((L, DHP, DP), const3),
            pl.BlockSpec((L, 1, DP), const3),
            pl.BlockSpec((1, DP), const2),
            pl.BlockSpec((1, DP), const2),
            pl.BlockSpec((DP, OUT_P), const2),
            pl.BlockSpec((1, OUT_P), const2),
        ],
        out_specs=pl.BlockSpec((TILE_B, OUT_P), lambda i: (i, 0)),
        compiler_params=pltpu.CompilerParams(
            dimension_semantics=("parallel",),
            vmem_limit_bytes=64 << 20),   # headroom beyond the default scoped limit
    )(xp, p["win"], p["bin"], p["w1"], p["b1"], p["w2"], p["b2"],
      p["head_scale"], p["head_shift"], p["wo"], p["bo"])

    out = out[:B, :out_features]
    # torch .squeeze(dim=-1): only squeezes a size-1 trailing dim
    if out.shape[-1] == 1:
        out = jnp.squeeze(out, axis=-1)
    return out


# ----------------------------- params ----------------------------------------

def init_raw_params(key, *, in_features_num, categories, d_embedding, d,
                    d_hidden_factor, n_layers, out_features):
    """Raw (PyTorch-shaped, unpadded) parameters."""
    d_hidden = int(d * d_hidden_factor)
    cnt = [0]

    def nrm(shape, scale=0.1):
        cnt[0] += 1
        return scale * jax.random.normal(jax.random.fold_in(key, cnt[0]),
                                         shape, dtype=jnp.float32)

    f_in = in_features_num + len(categories) * d_embedding
    raw = {
        "emb_tables": [nrm((c, d_embedding)) for c in categories],
        # Linear weights stored pre-transposed as [in, out]
        "in_w_t": nrm((f_in, d)),
        "in_b": nrm((d,)),
        "blocks": [],
        "out": {
            "bn_gamma": 1.0 + nrm((d,)),
            "bn_beta": nrm((d,)),
            "bn_mean": nrm((d,)),
            "bn_var": 0.5 + jnp.abs(nrm((d,))),
            "w_t": nrm((d, out_features)),
            "b": nrm((out_features,)),
        },
    }
    for _ in range(n_layers):
        raw["blocks"].append({
            "bn_gamma": 1.0 + nrm((d,)),
            "bn_beta": nrm((d,)),
            "bn_mean": nrm((d,)),
            "bn_var": 0.5 + jnp.abs(nrm((d,))),
            "w1_t": nrm((d, d_hidden)),
            "b1": nrm((d_hidden,)),
            "w2_t": nrm((d_hidden, d)),
            "b2": nrm((d,)),
        })
    return raw


def prepare_params(raw):
    """Fold BN into the following Linear, zero-pad all feature dims to 128,
    and stack per-block weights as [n_layers, ...] for the fused kernel."""
    f_in, d = raw["in_w_t"].shape
    d_hidden = raw["blocks"][0]["w1_t"].shape[1]
    out_features = raw["out"]["w_t"].shape[1]

    FP = _round_up(f_in, 128)
    DP = _round_up(d, 128)
    DHP = _round_up(d_hidden, 128)
    OUT_P = _round_up(out_features, 128)

    w1s, b1s, w2s, b2s = [], [], [], []
    for blk in raw["blocks"]:
        scale = blk["bn_gamma"] * jax.lax.rsqrt(blk["bn_var"] + EPS)
        shift = blk["bn_beta"] - blk["bn_mean"] * scale
        w1f = scale[:, None] * blk["w1_t"]          # diag(scale) @ W1
        b1f = shift @ blk["w1_t"] + blk["b1"]       # shift @ W1 + b1
        w1s.append(_pad2(w1f, DP, DHP))
        b1s.append(_pad2(b1f[None, :], 1, DHP))
        w2s.append(_pad2(blk["w2_t"], DHP, DP))
        b2s.append(_pad2(blk["b2"][None, :], 1, DP))

    o = raw["out"]
    hscale = o["bn_gamma"] * jax.lax.rsqrt(o["bn_var"] + EPS)
    hshift = o["bn_beta"] - o["bn_mean"] * hscale

    return {
        "emb_tables": raw["emb_tables"],
        "win": _pad2(raw["in_w_t"], FP, DP),
        "bin": _pad2(raw["in_b"][None, :], 1, DP),
        "w1": jnp.stack(w1s),
        "b1": jnp.stack(b1s),
        "w2": jnp.stack(w2s),
        "b2": jnp.stack(b2s),
        "head_scale": _pad2(hscale[None, :], 1, DP),
        "head_shift": _pad2(hshift[None, :], 1, DP),
        "wo": _pad2(o["w_t"], DP, OUT_P),
        "bo": _pad2(o["b"][None, :], 1, OUT_P),
        "out_features": out_features,
    }


# ----------------------------- pure-JAX reference ------------------------------

def reference_forward(raw, x_num, x_cat):
    embs = [tbl[x_cat[:, i]] for i, tbl in enumerate(raw["emb_tables"])]
    x = jnp.concatenate([x_num] + embs, axis=-1).astype(jnp.float32)
    x = x @ raw["in_w_t"] + raw["in_b"]
    for blk in raw["blocks"]:
        xn = ((x - blk["bn_mean"]) * jax.lax.rsqrt(blk["bn_var"] + EPS)
              * blk["bn_gamma"] + blk["bn_beta"])
        h = jnp.maximum(xn @ blk["w1_t"] + blk["b1"], 0.0)
        x = x + (h @ blk["w2_t"] + blk["b2"])
    o = raw["out"]
    xn = ((x - o["bn_mean"]) * jax.lax.rsqrt(o["bn_var"] + EPS)
          * o["bn_gamma"] + o["bn_beta"])
    y = jnp.maximum(xn, 0.0) @ o["w_t"] + o["b"]
    if y.shape[-1] == 1:
        y = jnp.squeeze(y, axis=-1)
    return y


# ----------------------------- main -------------------------------------------

if __name__ == "__main__":
    B = 8
    in_features_num = 4
    categories = [3, 5, 7]
    d_embedding = 4
    d = 32
    d_hidden_factor = 2.0
    n_layers = 2
    out_features = 1

    key = jax.random.PRNGKey(0)
    k_p, k_num, k_cat = jax.random.split(key, 3)

    raw = init_raw_params(
        k_p,
        in_features_num=in_features_num,
        categories=categories,
        d_embedding=d_embedding,
        d=d,
        d_hidden_factor=d_hidden_factor,
        n_layers=n_layers,
        out_features=out_features,
    )
    params = prepare_params(raw)

    x_num = jax.random.normal(k_num, (B, in_features_num), dtype=jnp.float32)
    x_cat = jnp.stack(
        [jax.random.randint(jax.random.fold_in(k_cat, i), (B,), 0, c)
         for i, c in enumerate(categories)],
        axis=-1,
    ).astype(jnp.int32)

    out = jax.block_until_ready(resnet_forward(params, x_num, x_cat))
    assert out.shape == (B,), out.shape

    ref = jax.block_until_ready(reference_forward(raw, x_num, x_cat))
    assert jnp.allclose(out, ref, rtol=1e-3, atol=1e-3), (out, ref)

    print("KERNEL_OK")
</pallas_src>

<mosaic_0001>
module attributes {stable_mosaic.version = 11 : i64} {
  func.func @fused_resnet_kernel(%arg0: i32, %arg1: memref<8x128xf32, #tpu.memory_space<vmem>>, %arg2: memref<128x128xf32, #tpu.memory_space<vmem>>, %arg3: memref<1x128xf32, #tpu.memory_space<vmem>>, %arg4: memref<2x128x128xf32, #tpu.memory_space<vmem>>, %arg5: memref<2x1x128xf32, #tpu.memory_space<vmem>>, %arg6: memref<2x128x128xf32, #tpu.memory_space<vmem>>, %arg7: memref<2x1x128xf32, #tpu.memory_space<vmem>>, %arg8: memref<1x128xf32, #tpu.memory_space<vmem>>, %arg9: memref<1x128xf32, #tpu.memory_space<vmem>>, %arg10: memref<128x128xf32, #tpu.memory_space<vmem>>, %arg11: memref<1x128xf32, #tpu.memory_space<vmem>>, %arg12: memref<8x128xf32, #tpu.memory_space<vmem>>) attributes {dimension_semantics = [#tpu.dimension_semantics<parallel>], iteration_bounds = array<i64: 1>, scalar_prefetch = 0 : i64, scratch_operands = 0 : i64, tpu.core_type = #tpu.core_type<tc>, window_params = [{transform_indices = @transform_0, window_bounds = array<i64: 8, 128>}, {pipeline_mode = #tpu.pipeline_mode<synchronous>, transform_indices = @transform_1, window_bounds = array<i64: 128, 128>}, {pipeline_mode = #tpu.pipeline_mode<synchronous>, transform_indices = @transform_2, window_bounds = array<i64: 1, 128>}, {pipeline_mode = #tpu.pipeline_mode<synchronous>, transform_indices = @transform_3, window_bounds = array<i64: 2, 128, 128>}, {pipeline_mode = #tpu.pipeline_mode<synchronous>, transform_indices = @transform_4, window_bounds = array<i64: 2, 1, 128>}, {pipeline_mode = #tpu.pipeline_mode<synchronous>, transform_indices = @transform_5, window_bounds = array<i64: 2, 128, 128>}, {pipeline_mode = #tpu.pipeline_mode<synchronous>, transform_indices = @transform_6, window_bounds = array<i64: 2, 1, 128>}, {pipeline_mode = #tpu.pipeline_mode<synchronous>, transform_indices = @transform_7, window_bounds = array<i64: 1, 128>}, {pipeline_mode = #tpu.pipeline_mode<synchronous>, transform_indices = @transform_8, window_bounds = array<i64: 1, 128>}, {pipeline_mode = #tpu.pipeline_mode<synchronous>, transform_indices = @transform_9, window_bounds = array<i64: 128, 128>}, {pipeline_mode = #tpu.pipeline_mode<synchronous>, transform_indices = @transform_10, window_bounds = array<i64: 1, 128>}, {transform_indices = @transform_11, window_bounds = array<i64: 8, 128>}]} {
    %c0 = arith.constant 0 : index
    %c0_0 = arith.constant 0 : index
    %0 = vector.load %arg1[%c0, %c0_0] : memref<8x128xf32, #tpu.memory_space<vmem>>, vector<8x128xf32>
    %c0_1 = arith.constant 0 : index
    %c0_2 = arith.constant 0 : index
    %1 = vector.load %arg2[%c0_1, %c0_2] : memref<128x128xf32, #tpu.memory_space<vmem>>, vector<128x128xf32>
    %cst = arith.constant dense<0.000000e+00> : vector<8x128xf32>
    %2 = tpu.matmul %0, %1, %cst {dimension_numbers = #tpu.dot_dimension_numbers<[1], [0], [0], [1], [0, 0, 1, 1], [], []>} : vector<8x128xf32>, vector<128x128xf32>, vector<8x128xf32> -> vector<8x128xf32>
    %c0_3 = arith.constant 0 : index
    %c0_4 = arith.constant 0 : index
    %3 = vector.load %arg3[%c0_3, %c0_4] : memref<1x128xf32, #tpu.memory_space<vmem>>, vector<1x128xf32>
    %4 = vector.broadcast %3 : vector<1x128xf32> to vector<8x128xf32>
    %5 = arith.addf %2, %4 : vector<8x128xf32>
    %c0_5 = arith.constant 0 : index
    %c0_6 = arith.constant 0 : index
    %c0_7 = arith.constant 0 : index
    %6 = vector.load %arg4[%c0_5, %c0_6, %c0_7] : memref<2x128x128xf32, #tpu.memory_space<vmem>>, vector<1x128x128xf32>
    %7 = vector.shape_cast %6 : vector<1x128x128xf32> to vector<128x128xf32>
    %cst_8 = arith.constant dense<0.000000e+00> : vector<8x128xf32>
    %8 = tpu.matmul %5, %7, %cst_8 {dimension_numbers = #tpu.dot_dimension_numbers<[1], [0], [0], [1], [0, 0, 1, 1], [], []>} : vector<8x128xf32>, vector<128x128xf32>, vector<8x128xf32> -> vector<8x128xf32>
    %c0_9 = arith.constant 0 : index
    %c0_10 = arith.constant 0 : index
    %c0_11 = arith.constant 0 : index
    %9 = vector.load %arg5[%c0_9, %c0_10, %c0_11] : memref<2x1x128xf32, #tpu.memory_space<vmem>>, vector<1x1x128xf32>
    %10 = vector.shape_cast %9 : vector<1x1x128xf32> to vector<1x128xf32>
    %11 = vector.broadcast %10 : vector<1x128xf32> to vector<8x128xf32>
    %12 = arith.addf %8, %11 : vector<8x128xf32>
    %cst_12 = arith.constant 0.000000e+00 : f32
    %13 = vector.broadcast %cst_12 : f32 to vector<8x128xf32>
    %14 = arith.maximumf %12, %13 : vector<8x128xf32>
    %c0_13 = arith.constant 0 : index
    %c0_14 = arith.constant 0 : index
    %c0_15 = arith.constant 0 : index
    %15 = vector.load %arg6[%c0_13, %c0_14, %c0_15] : memref<2x128x128xf32, #tpu.memory_space<vmem>>, vector<1x128x128xf32>
    %16 = vector.shape_cast %15 : vector<1x128x128xf32> to vector<128x128xf32>
    %cst_16 = arith.constant dense<0.000000e+00> : vector<8x128xf32>
    %17 = tpu.matmul %14, %16, %cst_16 {dimension_numbers = #tpu.dot_dimension_numbers<[1], [0], [0], [1], [0, 0, 1, 1], [], []>} : vector<8x128xf32>, vector<128x128xf32>, vector<8x128xf32> -> vector<8x128xf32>
    %c0_17 = arith.constant 0 : index
    %c0_18 = arith.constant 0 : index
    %c0_19 = arith.constant 0 : index
    %18 = vector.load %arg7[%c0_17, %c0_18, %c0_19] : memref<2x1x128xf32, #tpu.memory_space<vmem>>, vector<1x1x128xf32>
    %19 = vector.shape_cast %18 : vector<1x1x128xf32> to vector<1x128xf32>
    %20 = vector.broadcast %19 : vector<1x128xf32> to vector<8x128xf32>
    %21 = arith.addf %17, %20 : vector<8x128xf32>
    %22 = arith.addf %5, %21 : vector<8x128xf32>
    %c1 = arith.constant 1 : index
    %c0_20 = arith.constant 0 : index
    %c0_21 = arith.constant 0 : index
    %23 = vector.load %arg4[%c1, %c0_20, %c0_21] : memref<2x128x128xf32, #tpu.memory_space<vmem>>, vector<1x128x128xf32>
    %24 = vector.shape_cast %23 : vector<1x128x128xf32> to vector<128x128xf32>
    %cst_22 = arith.constant dense<0.000000e+00> : vector<8x128xf32>
    %25 = tpu.matmul %22, %24, %cst_22 {dimension_numbers = #tpu.dot_dimension_numbers<[1], [0], [0], [1], [0, 0, 1, 1], [], []>} : vector<8x128xf32>, vector<128x128xf32>, vector<8x128xf32> -> vector<8x128xf32>
    %c1_23 = arith.constant 1 : index
    %c0_24 = arith.constant 0 : index
    %c0_25 = arith.constant 0 : index
    %26 = vector.load %arg5[%c1_23, %c0_24, %c0_25] : memref<2x1x128xf32, #tpu.memory_space<vmem>>, vector<1x1x128xf32>
    %27 = vector.shape_cast %26 : vector<1x1x128xf32> to vector<1x128xf32>
    %28 = vector.broadcast %27 : vector<1x128xf32> to vector<8x128xf32>
    %29 = arith.addf %25, %28 : vector<8x128xf32>
    %cst_26 = arith.constant 0.000000e+00 : f32
    %30 = vector.broadcast %cst_26 : f32 to vector<8x128xf32>
    %31 = arith.maximumf %29, %30 : vector<8x128xf32>
    %c1_27 = arith.constant 1 : index
    %c0_28 = arith.constant 0 : index
    %c0_29 = arith.constant 0 : index
    %32 = vector.load %arg6[%c1_27, %c0_28, %c0_29] : memref<2x128x128xf32, #tpu.memory_space<vmem>>, vector<1x128x128xf32>
    %33 = vector.shape_cast %32 : vector<1x128x128xf32> to vector<128x128xf32>
    %cst_30 = arith.constant dense<0.000000e+00> : vector<8x128xf32>
    %34 = tpu.matmul %31, %33, %cst_30 {dimension_numbers = #tpu.dot_dimension_numbers<[1], [0], [0], [1], [0, 0, 1, 1], [], []>} : vector<8x128xf32>, vector<128x128xf32>, vector<8x128xf32> -> vector<8x128xf32>
    %c1_31 = arith.constant 1 : index
    %c0_32 = arith.constant 0 : index
    %c0_33 = arith.constant 0 : index
    %35 = vector.load %arg7[%c1_31, %c0_32, %c0_33] : memref<2x1x128xf32, #tpu.memory_space<vmem>>, vector<1x1x128xf32>
    %36 = vector.shape_cast %35 : vector<1x1x128xf32> to vector<1x128xf32>
    %37 = vector.broadcast %36 : vector<1x128xf32> to vector<8x128xf32>
    %38 = arith.addf %34, %37 : vector<8x128xf32>
    %39 = arith.addf %22, %38 : vector<8x128xf32>
    %c0_34 = arith.constant 0 : index
    %c0_35 = arith.constant 0 : index
    %40 = vector.load %arg8[%c0_34, %c0_35] : memref<1x128xf32, #tpu.memory_space<vmem>>, vector<1x128xf32>
    %41 = vector.broadcast %40 : vector<1x128xf32> to vector<8x128xf32>
    %42 = arith.mulf %39, %41 : vector<8x128xf32>
    %c0_36 = arith.constant 0 : index
    %c0_37 = arith.constant 0 : index
    %43 = vector.load %arg9[%c0_36, %c0_37] : memref<1x128xf32, #tpu.memory_space<vmem>>, vector<1x128xf32>
    %44 = vector.broadcast %43 : vector<1x128xf32> to vector<8x128xf32>
    %45 = arith.addf %42, %44 : vector<8x128xf32>
    %cst_38 = arith.constant 0.000000e+00 : f32
    %46 = vector.broadcast %cst_38 : f32 to vector<8x128xf32>
    %47 = arith.maximumf %45, %46 : vector<8x128xf32>
    %c0_39 = arith.constant 0 : index
    %c0_40 = arith.constant 0 : index
    %48 = vector.load %arg10[%c0_39, %c0_40] : memref<128x128xf32, #tpu.memory_space<vmem>>, vector<128x128xf32>
    %cst_41 = arith.constant dense<0.000000e+00> : vector<8x128xf32>
    %49 = tpu.matmul %47, %48, %cst_41 {dimension_numbers = #tpu.dot_dimension_numbers<[1], [0], [0], [1], [0, 0, 1, 1], [], []>} : vector<8x128xf32>, vector<128x128xf32>, vector<8x128xf32> -> vector<8x128xf32>
    %c0_42 = arith.constant 0 : index
    %c0_43 = arith.constant 0 : index
    %50 = vector.load %arg11[%c0_42, %c0_43] : memref<1x128xf32, #tpu.memory_space<vmem>>, vector<1x128xf32>
    %51 = vector.broadcast %50 : vector<1x128xf32> to vector<8x128xf32>
    %52 = arith.addf %49, %51 : vector<8x128xf32>
    %c0_44 = arith.constant 0 : index
    %c0_45 = arith.constant 0 : index
    %53 = vector.load %arg12[%c0_44, %c0_45] : memref<8x128xf32, #tpu.memory_space<vmem>>, vector<8x128xf32>
    tpu.vector_store %arg12[%c0_44, %c0_45], %52 {strides = array<i32>} : memref<8x128xf32, #tpu.memory_space<vmem>>, vector<8x128xf32>,
    return
  }
  func.func @transform_0(%arg0: i32) -> (i32, i32) {
    %c0_i32 = arith.constant 0 : i32
    %c0_i32_0 = arith.constant 0 : i32
    return %arg0, %c0_i32 : i32, i32
  }
  func.func @transform_1(%arg0: i32) -> (i32, i32) {
    %c0_i32 = arith.constant 0 : i32
    %c0_i32_0 = arith.constant 0 : i32
    %c0_i32_1 = arith.constant 0 : i32
    return %c0_i32, %c0_i32_0 : i32, i32
  }
  func.func @transform_2(%arg0: i32) -> (i32, i32) {
    %c0_i32 = arith.constant 0 : i32
    %c0_i32_0 = arith.constant 0 : i32
    %c0_i32_1 = arith.constant 0 : i32
    return %c0_i32, %c0_i32_0 : i32, i32
  }
  func.func @transform_3(%arg0: i32) -> (i32, i32, i32) {
    %c0_i32 = arith.constant 0 : i32
    %c0_i32_0 = arith.constant 0 : i32
    %c0_i32_1 = arith.constant 0 : i32
    %c0_i32_2 = arith.constant 0 : i32
    return %c0_i32, %c0_i32_0, %c0_i32_1 : i32, i32, i32
  }
  func.func @transform_4(%arg0: i32) -> (i32, i32, i32) {
    %c0_i32 = arith.constant 0 : i32
    %c0_i32_0 = arith.constant 0 : i32
    %c0_i32_1 = arith.constant 0 : i32
    %c0_i32_2 = arith.constant 0 : i32
    return %c0_i32, %c0_i32_0, %c0_i32_1 : i32, i32, i32
  }
  func.func @transform_5(%arg0: i32) -> (i32, i32, i32) {
    %c0_i32 = arith.constant 0 : i32
    %c0_i32_0 = arith.constant 0 : i32
    %c0_i32_1 = arith.constant 0 : i32
    %c0_i32_2 = arith.constant 0 : i32
    return %c0_i32, %c0_i32_0, %c0_i32_1 : i32, i32, i32
  }
  func.func @transform_6(%arg0: i32) -> (i32, i32, i32) {
    %c0_i32 = arith.constant 0 : i32
    %c0_i32_0 = arith.constant 0 : i32
    %c0_i32_1 = arith.constant 0 : i32
    %c0_i32_2 = arith.constant 0 : i32
    return %c0_i32, %c0_i32_0, %c0_i32_1 : i32, i32, i32
  }
  func.func @transform_7(%arg0: i32) -> (i32, i32) {
    %c0_i32 = arith.constant 0 : i32
    %c0_i32_0 = arith.constant 0 : i32
    %c0_i32_1 = arith.constant 0 : i32
    return %c0_i32, %c0_i32_0 : i32, i32
  }
  func.func @transform_8(%arg0: i32) -> (i32, i32) {
    %c0_i32 = arith.constant 0 : i32
    %c0_i32_0 = arith.constant 0 : i32
    %c0_i32_1 = arith.constant 0 : i32
    return %c0_i32, %c0_i32_0 : i32, i32
  }
  func.func @transform_9(%arg0: i32) -> (i32, i32) {
    %c0_i32 = arith.constant 0 : i32
    %c0_i32_0 = arith.constant 0 : i32
    %c0_i32_1 = arith.constant 0 : i32
    return %c0_i32, %c0_i32_0 : i32, i32
  }
  func.func @transform_10(%arg0: i32) -> (i32, i32) {
    %c0_i32 = arith.constant 0 : i32
    %c0_i32_0 = arith.constant 0 : i32
    %c0_i32_1 = arith.constant 0 : i32
    return %c0_i32, %c0_i32_0 : i32, i32
  }
  func.func @transform_11(%arg0: i32) -> (i32, i32) {
    %c0_i32 = arith.constant 0 : i32
    %c0_i32_0 = arith.constant 0 : i32
    return %arg0, %c0_i32 : i32, i32
  }
}

</mosaic_0001>

<bundles_post_ra>
// kernel: tpu_custom_call.1
= control target key start
LH: loop header
LB: loop body
LE: loop exit
PB: predicated region body
PF: predicated region fallthrough
CT: control target
= control target key end

     0   :  { %16 = vsyncpa [#allocation3], 0  ;;  %s1843_s0 = inlined_call_operand.hbm [shape: f32[8,128], index: 0, kind: input, shape index: {}]   ;;  %s1844_s1 = inlined_call_operand.hbm [shape: f32[128,128], index: 1, kind: input, shape index: {}]   ;;  %s1845_s2 = inlined_call_operand.hbm [shape: f32[1,128], index: 2, kind: input, shape index: {}]   ;;  %s1846_s3 = inlined_call_operand.hbm [shape: f32[2,128,128], index: 3, kind: input, shape index: {}]   ;;  %s1847_s4 = inlined_call_operand.hbm [shape: f32[2,1,128], index: 4, kind: input, shape index: {}]   ;;  %s1848_s5 = inlined_call_operand.hbm [shape: f32[2,128,128], index: 5, kind: input, shape index: {}]   ;;  %s1849_s6 = inlined_call_operand.hbm [shape: f32[2,1,128], index: 6, kind: input, shape index: {}]   ;;  %s1850_s7 = inlined_call_operand.hbm [shape: f32[1,128], index: 7, kind: input, shape index: {}]   ;;  %s1851_s8 = inlined_call_operand.hbm [shape: f32[1,128], index: 8, kind: input, shape index: {}]   ;;  %s1852_s9 = inlined_call_operand.hbm [shape: f32[128,128], index: 9, kind: input, shape index: {}]   ;;  %s1853_s10 = inlined_call_operand.hbm [shape: f32[1,128], index: 10, kind: input, shape index: {}]   ;;  %s1854_s11 = inlined_call_operand.hbm [shape: f32[8,128], index: 11, kind: output, shape index: {}]  }
   0x1   :  { %17 = vsyncpa [#allocation6], 0 }
   0x2   :  { %18 = vsyncpa [#allocation9], 0 }
   0x3   :  { %19 = vsyncpa [#allocation12], 0 }
   0x4   :  { %20 = vsyncpa [#allocation15], 0 }
   0x5   :  { %21 = vsyncpa [#allocation18], 0 }
   0x6   :  { %22 = vsyncpa [#allocation4], 0  ;;  %s1544_s17 = smov [#allocation5]   ;;  %s1266_s21 = scalar_lea.hbm %s1844_s1, 2048 }
   0x7   :  { %s38_s18 = sshll.u32 %s1544_s17, 4  ;;  %p1267_p0 = scmp.ne.s32.totalorder %s1844_s1, %s1266_s21  ;;  %s39_s18 = int_to_ptr.vmem [resolvable:$true] %s38_s18 }
   0x8   :  { %p1270_p1 = scmp.lt.u32.totalorder %s1266_s21, %s1844_s1 }
   0xa   :  { %p1272_p2 = pnand %p1270_p1, %p1267_p0 }
   0xc   :  { %1275 = shalt.err (!%p1272_p2)
}
   0xd   :  { %s1276_s26 = scalar_lea.vmem %s39_s18, 2048  ;;  %p1281_p4 = scmp.lt.s32.totalorder %s39_s18, %s39_s18 }
   0xe   :  { %p1277_p3 = scmp.ne.s32.totalorder %s39_s18, %s1276_s26  ;;  %p1282_p5 = scmp.lt.s32.totalorder %s1276_s26, %s1276_s26 }
  0x10   :  { %p1283_p6 = por %p1282_p5, %p1281_p4 }
  0x12   :  { %p1284_p7 = pnand %p1283_p6, %p1277_p3 }
  0x14   :  { %1287 = shalt.err (!%p1284_p7)
}
  0x15   :  { %s1545_s27 = smov 128   ;;  %s1546_s28 = smov 8  }
  0x16   :  { %44 = dma.hbm_to_vmem [thread:$0]  %s1844_s1, 2048, %s39_s18, [#allocation6], %s1545_s27, %s1545_s27, %s1546_s28  }
  0x17   :  { %s1547_s12 = smov [#allocation8]   ;;  %s1548_s14 = smov [#allocation11]  }
  0x18   :  { %s60_s13 = sshll.u32 %s1547_s12, 4  ;;  %s84_s15 = sshll.u32 %s1548_s14, 4  ;;  %s61_s13 = int_to_ptr.vmem [resolvable:$true] %s60_s13  ;;  %s85_s15 = int_to_ptr.vmem [resolvable:$true] %s84_s15 }
  0x19   :  { %s1288_s19 = scalar_lea.hbm %s1846_s3, 4096 }
  0x1a   :  { %p1289_p8 = scmp.ne.s32.totalorder %s1846_s3, %s1288_s19  ;;  %p1292_p9 = scmp.lt.u32.totalorder %s1288_s19, %s1846_s3 }
  0x1c   :  { %p1294_p10 = pnand %p1292_p9, %p1289_p8 }
  0x1e   :  { %1297 = shalt.err (!%p1294_p10)
}
  0x1f   :  { %s1298_s1 = scalar_lea.vmem %s61_s13, 4096  ;;  %p1303_p12 = scmp.lt.s32.totalorder %s61_s13, %s61_s13 }
  0x20   :  { %p1299_p11 = scmp.ne.s32.totalorder %s61_s13, %s1298_s1  ;;  %p1304_p13 = scmp.lt.s32.totalorder %s1298_s1, %s1298_s1 }
  0x22   :  { %p1305_p0 = por %p1304_p13, %p1303_p12 }
  0x24   :  { %p1306_p1 = pnand %p1305_p0, %p1299_p11 }
  0x26   :  { %1309 = shalt.err (!%p1306_p1)
}
  0x27   :  { %66 = dma.hbm_to_vmem [thread:$0]  %s1846_s3, 4096, %s61_s13, [#allocation9], %s1545_s27, %s1545_s27, %s1546_s28  }
  0x28   :  { %s1310_s29 = scalar_lea.hbm %s1848_s5, 4096 }
  0x29   :  { %p1311_p2 = scmp.ne.s32.totalorder %s1848_s5, %s1310_s29  ;;  %p1314_p3 = scmp.lt.u32.totalorder %s1310_s29, %s1848_s5 }
  0x2b   :  { %p1316_p4 = pnand %p1314_p3, %p1311_p2 }
  0x2d   :  { %1319 = shalt.err (!%p1316_p4)
}
  0x2e   :  { %s1320_s17 = scalar_lea.vmem %s85_s15, 4096  ;;  %p1325_p6 = scmp.lt.s32.totalorder %s85_s15, %s85_s15 }
  0x2f   :  { %p1321_p5 = scmp.ne.s32.totalorder %s85_s15, %s1320_s17  ;;  %p1326_p7 = scmp.lt.s32.totalorder %s1320_s17, %s1320_s17 }
  0x31   :  { %p1327_p8 = por %p1326_p7, %p1325_p6 }
  0x33   :  { %p1328_p9 = pnand %p1327_p8, %p1321_p5 }
  0x35   :  { %1331 = shalt.err (!%p1328_p9)
}
  0x36   :  { %90 = dma.hbm_to_vmem [thread:$0]  %s1848_s5, 4096, %s85_s15, [#allocation12], %s1545_s27, %s1545_s27, %s1546_s28  }
  0x37   :  { %s1549_s19 = smov [#allocation14]   ;;  %s1550_s21 = smov [#allocation17]  }
  0x38   :  { %s109_s20 = sshll.u32 %s1549_s19, 4  ;;  %s128_s22 = sshll.u32 %s1550_s21, 4  ;;  %s110_s20 = int_to_ptr.vmem [resolvable:$true] %s109_s20  ;;  %s129_s22 = int_to_ptr.vmem [resolvable:$true] %s128_s22 }
  0x39   :  { %s1332_s18 = scalar_lea.hbm %s1850_s7, 16 }
  0x3a   :  { %p1333_p10 = scmp.ne.s32.totalorder %s1850_s7, %s1332_s18  ;;  %p1336_p11 = scmp.lt.u32.totalorder %s1332_s18, %s1850_s7 }
  0x3c   :  { %p1338_p12 = pnand %p1336_p11, %p1333_p10 }
  0x3e   :  { %1341 = shalt.err (!%p1338_p12)
}
  0x3f   :  { %s1342_s5 = scalar_lea.vmem %s110_s20, 16  ;;  %s1346_s15 = scalar_lea.vmem %s110_s20, 32 }
  0x40   :  { %p1343_p13 = scmp.ne.s32.totalorder %s110_s20, %s1342_s5  ;;  %p1347_p0 = scmp.lt.s32.totalorder %s110_s20, %s110_s20 }
  0x41   :  { %p1348_p1 = scmp.lt.s32.totalorder %s1346_s15, %s1342_s5 }
  0x43   :  { %p1349_p2 = por %p1348_p1, %p1347_p0 }
  0x45   :  { %p1350_p3 = pnand %p1349_p2, %p1343_p13 }
  0x47   :  { %1353 = shalt.err (!%p1350_p3)
}
  0x48   :  { %112 = dma.hbm_to_vmem [thread:$0]  %s1850_s7, 16, %s110_s20, [#allocation15]  }
  0x49   :  { %s1354_s17 = scalar_lea.hbm %s1852_s9, 2048 }
  0x4a   :  { %p1355_p4 = scmp.ne.s32.totalorder %s1852_s9, %s1354_s17  ;;  %p1358_p5 = scmp.lt.u32.totalorder %s1354_s17, %s1852_s9 }
  0x4c   :  { %p1360_p6 = pnand %p1358_p5, %p1355_p4 }
  0x4e   :  { %1363 = shalt.err (!%p1360_p6)
}
  0x4f   :  { %s1364_s23 = scalar_lea.vmem %s129_s22, 2048  ;;  %p1369_p8 = scmp.lt.s32.totalorder %s129_s22, %s129_s22 }
  0x50   :  { %p1365_p7 = scmp.ne.s32.totalorder %s129_s22, %s1364_s23  ;;  %p1370_p9 = scmp.lt.s32.totalorder %s1364_s23, %s1364_s23 }
  0x52   :  { %p1371_p10 = por %p1370_p9, %p1369_p8 }
  0x54   :  { %p1372_p11 = pnand %p1371_p10, %p1365_p7 }
  0x56   :  { %1375 = shalt.err (!%p1372_p11)
}
  0x57   :  { %134 = dma.hbm_to_vmem [thread:$0]  %s1852_s9, 2048, %s129_s22, [#allocation18], %s1545_s27, %s1545_s27, %s1546_s28  }
  0x58   :  { %s1551_s1 = smov [#allocation2]   ;;  %s1552_s24 = smov [#allocation7]  }
  0x59   :  { %s29_s18 = sshll.u32 %s1551_s1, 4  ;;  %s51_s25 = sshll.u32 %s1552_s24, 4  ;;  %s30_s18 = int_to_ptr.vmem [resolvable:$true] %s29_s18  ;;  %s52_s25 = int_to_ptr.vmem [resolvable:$true] %s51_s25 }
  0x5a   :  { %s1376_s5 = scalar_lea.hbm %s1843_s0, 128 }
  0x5b   :  { %p1377_p12 = scmp.ne.s32.totalorder %s1843_s0, %s1376_s5  ;;  %p1380_p13 = scmp.lt.u32.totalorder %s1376_s5, %s1843_s0 }
  0x5d   :  { %p1382_p0 = pnand %p1380_p13, %p1377_p12 }
  0x5f   :  { %1385 = shalt.err (!%p1382_p0)
}
  0x60   :  { %s1386_s9 = scalar_lea.vmem %s30_s18, 128  ;;  %p1391_p2 = scmp.lt.s32.totalorder %s30_s18, %s30_s18 }
  0x61   :  { %p1387_p1 = scmp.ne.s32.totalorder %s30_s18, %s1386_s9  ;;  %p1392_p3 = scmp.lt.s32.totalorder %s1386_s9, %s1386_s9 }
  0x63   :  { %p1393_p4 = por %p1392_p3, %p1391_p2 }
  0x65   :  { %p1394_p5 = pnand %p1393_p4, %p1387_p1 }
  0x67   :  { %1397 = shalt.err (!%p1394_p5)
}
  0x68   :  { %32 = dma.hbm_to_vmem [thread:$0]  %s1843_s0, 128, %s30_s18, [#allocation3]  }
  0x69   :  { %s1398_s17 = scalar_lea.hbm %s1845_s2, 16 }
  0x6a   :  { %p1399_p6 = scmp.ne.s32.totalorder %s1845_s2, %s1398_s17  ;;  %p1402_p7 = scmp.lt.u32.totalorder %s1398_s17, %s1845_s2 }
  0x6c   :  { %p1404_p8 = pnand %p1402_p7, %p1399_p6 }
  0x6e   :  { %1407 = shalt.err (!%p1404_p8)
}
  0x6f   :  { %s1408_s23 = scalar_lea.vmem %s52_s25, 16  ;;  %s1412_s7 = scalar_lea.vmem %s52_s25, 32 }
  0x70   :  { %p1409_p9 = scmp.ne.s32.totalorder %s52_s25, %s1408_s23  ;;  %p1413_p10 = scmp.lt.s32.totalorder %s52_s25, %s52_s25 }
  0x71   :  { %p1414_p11 = scmp.lt.s32.totalorder %s1412_s7, %s1408_s23 }
  0x73   :  { %p1415_p12 = por %p1414_p11, %p1413_p10 }
  0x75   :  { %p1416_p13 = pnand %p1415_p12, %p1409_p9 }
  0x77   :  { %1419 = shalt.err (!%p1416_p13)
}
  0x78   :  { %54 = dma.hbm_to_vmem [thread:$0]  %s1845_s2, 16, %s52_s25, [#allocation6]  }
  0x79   :  { %s1553_s1 = smov [#allocation10]   ;;  %s1420_s29 = scalar_lea.hbm %s1847_s4, 32 }
  0x7a   :  { %s72_s18 = sshll.u32 %s1553_s1, 4  ;;  %p1421_p0 = scmp.ne.s32.totalorder %s1847_s4, %s1420_s29  ;;  %s73_s18 = int_to_ptr.vmem [resolvable:$true] %s72_s18 }
  0x7b   :  { %p1424_p1 = scmp.lt.u32.totalorder %s1420_s29, %s1847_s4 }
  0x7d   :  { %p1426_p2 = pnand %p1424_p1, %p1421_p0 }
  0x7f   :  { %1429 = shalt.err (!%p1426_p2)
}
  0x80   :  { %s1430_s14 = scalar_lea.vmem %s73_s18, 32  ;;  %p1435_p4 = scmp.lt.s32.totalorder %s73_s18, %s73_s18 }
  0x81   :  { %p1431_p3 = scmp.ne.s32.totalorder %s73_s18, %s1430_s14  ;;  %p1436_p5 = scmp.lt.s32.totalorder %s1430_s14, %s1430_s14 }
  0x83   :  { %p1437_p6 = por %p1436_p5, %p1435_p4 }
  0x85   :  { %p1438_p7 = pnand %p1437_p6, %p1431_p3 }
  0x87   :  { %1441 = shalt.err (!%p1438_p7)
}
  0x88   :  { %s1554_s2 = smov 16   ;;  %s1555_s25 = smov 1  }
  0x89   :  { %78 = dma.hbm_to_vmem [thread:$0]  %s1847_s4, 32, %s73_s18, [#allocation9], %s1554_s2, %s1554_s2, %s1555_s25  }
  0x8a   :  { %s1556_s28 = smov [#allocation13]   ;;  %s1557_s16 = smov [#allocation16]  }
  0x8b   :  { %s96_s22 = sshll.u32 %s1556_s28, 4  ;;  %s119_s17 = sshll.u32 %s1557_s16, 4  ;;  %s97_s22 = int_to_ptr.vmem [resolvable:$true] %s96_s22  ;;  %s120_s17 = int_to_ptr.vmem [resolvable:$true] %s119_s17 }
  0x8c   :  { %s1442_s19 = scalar_lea.hbm %s1849_s6, 32 }
  0x8d   :  { %p1443_p8 = scmp.ne.s32.totalorder %s1849_s6, %s1442_s19  ;;  %p1446_p9 = scmp.lt.u32.totalorder %s1442_s19, %s1849_s6 }
  0x8f   :  { %p1448_p10 = pnand %p1446_p9, %p1443_p8 }
  0x91   :  { %1451 = shalt.err (!%p1448_p10)
}
  0x92   :  { %s1452_s4 = scalar_lea.vmem %s97_s22, 32  ;;  %p1457_p12 = scmp.lt.s32.totalorder %s97_s22, %s97_s22 }
  0x93   :  { %p1453_p11 = scmp.ne.s32.totalorder %s97_s22, %s1452_s4  ;;  %p1458_p13 = scmp.lt.s32.totalorder %s1452_s4, %s1452_s4 }
  0x95   :  { %p1459_p0 = por %p1458_p13, %p1457_p12 }
  0x97   :  { %p1460_p1 = pnand %p1459_p0, %p1453_p11 }
  0x99   :  { %1463 = shalt.err (!%p1460_p1)
}
  0x9a   :  { %102 = dma.hbm_to_vmem [thread:$0]  %s1849_s6, 32, %s97_s22, [#allocation12], %s1554_s2, %s1554_s2, %s1555_s25  }
  0x9b   :  { %s1464_s26 = scalar_lea.hbm %s1851_s8, 16 }
  0x9c   :  { %p1465_p2 = scmp.ne.s32.totalorder %s1851_s8, %s1464_s26  ;;  %p1468_p3 = scmp.lt.u32.totalorder %s1464_s26, %s1851_s8 }
  0x9e   :  { %p1470_p4 = pnand %p1468_p3, %p1465_p2 }
  0xa0   :  { %1473 = shalt.err (!%p1470_p4)
}
  0xa1   :  { %s1474_s12 = scalar_lea.vmem %s120_s17, 16  ;;  %s1478_s14 = scalar_lea.vmem %s120_s17, 32 }
  0xa2   :  { %p1475_p5 = scmp.ne.s32.totalorder %s120_s17, %s1474_s12  ;;  %p1479_p6 = scmp.lt.s32.totalorder %s120_s17, %s120_s17 }
  0xa3   :  { %p1480_p7 = scmp.lt.s32.totalorder %s1478_s14, %s1474_s12 }
  0xa5   :  { %p1481_p8 = por %p1480_p7, %p1479_p6 }
  0xa7   :  { %p1482_p9 = pnand %p1481_p8, %p1475_p5 }
  0xa9   :  { %1485 = shalt.err (!%p1482_p9)
}
  0xaa   :  { %122 = dma.hbm_to_vmem [thread:$0]  %s1851_s8, 16, %s120_s17, [#allocation15]  }
  0xab   :  { %s1558_s25 = smov [#allocation19]   ;;  %s1486_s22 = scalar_lea.hbm %s1853_s10, 16 }
  0xac   :  { %s141_s9 = sshll.u32 %s1558_s25, 4  ;;  %p1487_p10 = scmp.ne.s32.totalorder %s1853_s10, %s1486_s22  ;;  %s142_s9 = int_to_ptr.vmem [resolvable:$true] %s141_s9 }
  0xad   :  { %p1490_p11 = scmp.lt.u32.totalorder %s1486_s22, %s1853_s10 }
  0xaf   :  { %p1492_p12 = pnand %p1490_p11, %p1487_p10 }
  0xb1   :  { %1495 = shalt.err (!%p1492_p12)
}
  0xb2   :  { %s1496_s21 = scalar_lea.vmem %s142_s9, 16  ;;  %s1500_s8 = scalar_lea.vmem %s142_s9, 32 }
  0xb3   :  { %p1497_p13 = scmp.ne.s32.totalorder %s142_s9, %s1496_s21  ;;  %p1501_p0 = scmp.lt.s32.totalorder %s142_s9, %s142_s9 }
  0xb4   :  { %p1502_p1 = scmp.lt.s32.totalorder %s1500_s8, %s1496_s21 }
  0xb6   :  { %p1503_p2 = por %p1502_p1, %p1501_p0 }
  0xb8   :  { %p1504_p3 = pnand %p1503_p2, %p1497_p13 }
  0xba   :  { %1507 = shalt.err (!%p1504_p3)
}
  0xbb   :  { %144 = dma.hbm_to_vmem [thread:$0]  %s1853_s10, 16, %s142_s9, [#allocation18]  }
  0xbc   :  { %1530 = dma.done.wait [#allocation3], 128  }
  0xbd   :  { %1531 = vsyncadd [#allocation3], 4294967168 }
  0xbe   :  { %1532 = dma.done.wait [#allocation6], 2064  }
  0xbf   :  { %1533 = vsyncadd [#allocation6], 4294965232 }
  0xc0   :  { %1534 = dma.done.wait [#allocation9], 4128  }
  0xc1   :  { %1535 = vsyncadd [#allocation9], 4294963168 }
  0xc2   :  { %1536 = dma.done.wait [#allocation12], 4128  }
  0xc3   :  { %1537 = vsyncadd [#allocation12], 4294963168 }
  0xc4   :  { %1538 = dma.done.wait [#allocation15], 32  }
  0xc5   :  { %1539 = vsyncadd [#allocation15], 4294967264 }
  0xc6   :  { %1540 = dma.done.wait [#allocation18], 2064  }
  0xc7   :  { %1541 = vsyncadd [#allocation18], 4294965232  ;;  %v1559_v0 = vmov 0.0|0.0   ;;  %vm1560_vm0 = vmmov 0   ;;  %v1561_v1 = vmov 0.0   ;;  %v179_v2 = vld [vmem:[#allocation5] sm:$0xff] }
  0xc8   :  { %1103 = vmatprep.subr.bf16.mxu0 %v1559_v0  ;;  %925 = vmatprep.mubr.msk.f32.mxu0 %vm1560_vm0, %v1561_v1  ;;  %v180_v3 = vld [vmem:[#allocation5 + $0x8] sm:$0xff]  ;;  %v181_v4 = vld [vmem:[#allocation5 + $0x10] sm:$0xff]  ;;  %v182_v6 = vld [vmem:[#allocation5 + $0x18] sm:$0xff]  ;;  %s1562_s10 = smov [#allocation20]  }
  0xc9   :  { %1127 = vmatprep.subr.bf16.mxu1 %v1559_v0  ;;  %960 = vmatprep.mubr.msk.f32.mxu1 %vm1560_vm0, %v1561_v1  ;;  %v1104_v5 = vpack.c.bf16 %v180_v3, %v179_v2  ;;  %v1107_v7 = vpack.c.bf16 %v182_v6, %v181_v4  ;;  %v183_v8 = vld [vmem:[#allocation5 + $0x20] sm:$0xff]  ;;  %v184_v9 = vld [vmem:[#allocation5 + $0x28] sm:$0xff]  ;;  %v274_v12 = vld [vmem:[#allocation8 + $0x10] sm:$0xff]  ;;  %s769_s7 = sshll.u32 %s1562_s10, 4  ;;  %s770_s7 = int_to_ptr.vmem [resolvable:$true] %s769_s7 }
  0xca   :  { %v272_v10 = vld [vmem:[#allocation8] sm:$0xff]  ;;  %v273_v11 = vld [vmem:[#allocation8 + $0x8] sm:$0xff]  ;;  %v275_v13 = vld [vmem:[#allocation8 + $0x18] sm:$0xff]  ;;  %v1110_v14 = vpack.c.bf16 %v184_v9, %v183_v8  ;;  %s1508_s0 = scalar_lea.vmem %s770_s7, 128  ;;  %p1513_p5 = scmp.lt.s32.totalorder %s770_s7, %s770_s7 }
  0xcb   :  { %1105 = vmatpush3.bf16.msra.mxu0 %v1104_v5  ;;  %v1128_v15 = vpack.c.bf16 %v273_v11, %v272_v10  ;;  %v185_v16 = vld [vmem:[#allocation5 + $0x30] sm:$0xff]  ;;  %v186_v17 = vld [vmem:[#allocation5 + $0x38] sm:$0xff]  ;;  %v1131_v18 = vpack.c.bf16 %v275_v13, %v274_v12  ;;  %v276_v19 = vld [vmem:[#allocation8 + $0x20] sm:$0xff]  ;;  %p1509_p4 = scmp.ne.s32.totalorder %s770_s7, %s1508_s0  ;;  %p1514_p6 = scmp.lt.s32.totalorder %s1508_s0, %s1508_s0 }
  0xcc   :  { %1106 = vmatprep.subr.bf16.mxu0 %v1559_v0  ;;  %v277_v20 = vld [vmem:[#allocation8 + $0x28] sm:$0xff]  ;;  %v1113_v21 = vpack.c.bf16 %v186_v17, %v185_v16  ;;  %v187_v22 = vld [vmem:[#allocation5 + $0x40] sm:$0xff]  ;;  %v278_v25 = vld [vmem:[#allocation8 + $0x30] sm:$0xff] }
  0xcd   :  { %1129 = vmatpush3.bf16.msra.mxu1 %v1128_v15  ;;  %v188_v23 = vld [vmem:[#allocation5 + $0x48] sm:$0xff]  ;;  %v1134_v24 = vpack.c.bf16 %v277_v20, %v276_v19  ;;  %v279_v26 = vld [vmem:[#allocation8 + $0x38] sm:$0xff]  ;;  %v189_v28 = vld [vmem:[#allocation5 + $0x50] sm:$0xff]  ;;  %p1515_p7 = por %p1514_p6, %p1513_p5 }
  0xce   :  { %1130 = vmatprep.subr.bf16.mxu1 %v1559_v0  ;;  %v1116_v27 = vpack.c.bf16 %v188_v23, %v187_v22  ;;  %v190_v29 = vld [vmem:[#allocation5 + $0x58] sm:$0xff]  ;;  %v1137_v30 = vpack.c.bf16 %v279_v26, %v278_v25  ;;  %v280_v31 = vld [vmem:[#allocation8 + $0x40] sm:$0xff]  ;;  %v281_v32 = vld [vmem:[#allocation8 + $0x48] sm:$0xff] }
  0xcf   :  { %1108 = vmatpush3.bf16.msra.mxu0 %v1107_v7  ;;  %v1119_v33 = vpack.c.bf16 %v190_v29, %v189_v28  ;;  %v191_v34 = vld [vmem:[#allocation5 + $0x60] sm:$0xff]  ;;  %v192_v35 = vld [vmem:[#allocation5 + $0x68] sm:$0xff]  ;;  %v1140_v36 = vpack.c.bf16 %v281_v32, %v280_v31  ;;  %v282_v37 = vld [vmem:[#allocation8 + $0x50] sm:$0xff]  ;;  %p1516_p8 = pnand %p1515_p7, %p1509_p4 }
  0xd0   :  { %1109 = vmatprep.subr.bf16.mxu0 %v1559_v0  ;;  %v283_v38 = vld [vmem:[#allocation8 + $0x58] sm:$0xff]  ;;  %v1122_v39 = vpack.c.bf16 %v192_v35, %v191_v34  ;;  %v193_v40 = vld [vmem:[#allocation5 + $0x70] sm:$0xff]  ;;  %v284_v43 = vld [vmem:[#allocation8 + $0x60] sm:$0xff] }
  0xd1   :  { %1132 = vmatpush3.bf16.msra.mxu1 %v1131_v18  ;;  %v194_v41 = vld [vmem:[#allocation5 + $0x78] sm:$0xff]  ;;  %v1143_v42 = vpack.c.bf16 %v283_v38, %v282_v37  ;;  %v285_v44 = vld [vmem:[#allocation8 + $0x68] sm:$0xff]  ;;  %v783_v10 = vld [vmem:[#allocation7] ss:$0 sm:$0xff] }
  0xd2   :  { %1133 = vmatprep.subr.bf16.mxu1 %v1559_v0  ;;  %v1125_v45 = vpack.c.bf16 %v194_v41, %v193_v40  ;;  %v1146_v46 = vpack.c.bf16 %v285_v44, %v284_v43  ;;  %v178_v47 = vld [vmem:[#allocation2] sm:$0xff]  ;;  %v366_v51 = vld [vmem:[#allocation11] sm:$0xff]  ;;  %v367_v52 = vld [vmem:[#allocation11 + $0x8] sm:$0xff] }
  0xd3   :  { %1111 = vmatpush3.bf16.msra.mxu0 %v1110_v14  ;;  %v286_v48 = vld [vmem:[#allocation8 + $0x70] sm:$0xff]  ;;  %v287_v49 = vld [vmem:[#allocation8 + $0x78] sm:$0xff]  ;;  %v1152_v54 = vpack.c.bf16 %v367_v52, %v366_v51  ;;  %v370_v57 = vld [vmem:[#allocation11 + $0x20] sm:$0xff] }
  0xd4   :  { %1112 = vmatprep.subr.bf16.mxu0 %v1559_v0  ;;  %v1149_v50 = vpack.c.bf16 %v287_v49, %v286_v48  ;;  %v368_v53 = vld [vmem:[#allocation11 + $0x10] sm:$0xff]  ;;  %v369_v55 = vld [vmem:[#allocation11 + $0x18] sm:$0xff]  ;;  %v371_v58 = vld [vmem:[#allocation11 + $0x28] sm:$0xff] }
  0xd5   :  { %1135 = vmatpush3.bf16.msra.mxu1 %v1134_v24  ;;  %v1155_v56 = vpack.c.bf16 %v369_v55, %v368_v53  ;;  %v1158_v59 = vpack.c.bf16 %v371_v58, %v370_v57  ;;  %v372_v60 = vld [vmem:[#allocation11 + $0x30] sm:$0xff]  ;;  %v373_v61 = vld [vmem:[#allocation11 + $0x38] sm:$0xff]  ;;  %v374_v63 = vld [vmem:[#allocation11 + $0x40] sm:$0xff] }
  0xd6   :  { %1136 = vmatprep.subr.bf16.mxu1 %v1559_v0  ;;  %v1161_v62 = vpack.c.bf16 %v373_v61, %v372_v60  ;;  %v375_v2 = vld [vmem:[#allocation11 + $0x48] sm:$0xff]  ;;  %v376_v4 = vld [vmem:[#allocation11 + $0x50] sm:$0xff]  ;;  %v377_v5 = vld [vmem:[#allocation11 + $0x58] sm:$0xff] }
  0xd7   :  { %1114 = vmatpush3.bf16.msra.mxu0 %v1113_v21  ;;  %v1164_v3 = vpack.c.bf16 %v375_v2, %v374_v63  ;;  %v1167_v6 = vpack.c.bf16 %v377_v5, %v376_v4  ;;  %v378_v7 = vld [vmem:[#allocation11 + $0x60] sm:$0xff]  ;;  %v379_v8 = vld [vmem:[#allocation11 + $0x68] sm:$0xff]  ;;  %v380_v14 = vld [vmem:[#allocation11 + $0x70] sm:$0xff] }
  0xd8   :  { %1115 = vmatprep.subr.bf16.mxu0 %v1559_v0  ;;  %v1170_v9 = vpack.c.bf16 %v379_v8, %v378_v7  ;;  %v381_v15 = vld [vmem:[#allocation11 + $0x78] sm:$0xff]  ;;  %v462_v18 = vld [vmem:[#allocation8 + $0x88] sm:$0xff]  ;;  %v463_v19 = vld [vmem:[#allocation8 + $0x90] sm:$0xff] }
  0xd9   :  { %1138 = vmatpush3.bf16.msra.mxu1 %v1137_v30  ;;  %v1173_v16 = vpack.c.bf16 %v381_v15, %v380_v14  ;;  %v461_v17 = vld [vmem:[#allocation8 + $0x80] sm:$0xff]  ;;  %v464_v21 = vld [vmem:[#allocation8 + $0x98] sm:$0xff]  ;;  %v466_v24 = vld [vmem:[#allocation8 + $0xa8] sm:$0xff] }
  0xda   :  { %1139 = vmatprep.subr.bf16.mxu1 %v1559_v0  ;;  %v1176_v20 = vpack.c.bf16 %v462_v18, %v461_v17  ;;  %v1179_v22 = vpack.c.bf16 %v464_v21, %v463_v19  ;;  %v465_v23 = vld [vmem:[#allocation8 + $0xa0] sm:$0xff]  ;;  %v467_v26 = vld [vmem:[#allocation8 + $0xb0] sm:$0xff]  ;;  %v470_v30 = vld [vmem:[#allocation8 + $0xc8] sm:$0xff] }
  0xdb   :  { %1117 = vmatpush3.bf16.msra.mxu0 %v1116_v27  ;;  %v1182_v25 = vpack.c.bf16 %v466_v24, %v465_v23  ;;  %v468_v27 = vld [vmem:[#allocation8 + $0xb8] sm:$0xff]  ;;  %v469_v29 = vld [vmem:[#allocation8 + $0xc0] sm:$0xff]  ;;  %v471_v32 = vld [vmem:[#allocation8 + $0xd0] sm:$0xff] }
  0xdc   :  { %1118 = vmatprep.subr.bf16.mxu0 %v1559_v0  ;;  %v1185_v28 = vpack.c.bf16 %v468_v27, %v467_v26  ;;  %v1188_v31 = vpack.c.bf16 %v470_v30, %v469_v29  ;;  %v473_v35 = vld [vmem:[#allocation8 + $0xe0] sm:$0xff]  ;;  %v475_v43 = vld [vmem:[#allocation8 + $0xf0] sm:$0xff]  ;;  %v476_v44 = vld [vmem:[#allocation8 + $0xf8] sm:$0xff] }
  0xdd   :  { %1141 = vmatpush3.bf16.msra.mxu1 %v1140_v36  ;;  %v474_v36 = vld [vmem:[#allocation8 + $0xe8] sm:$0xff]  ;;  %v784_v38 = vld [vmem:[#allocation10] ss:$0 sm:$0xff]  ;;  %v559_v48 = vld [vmem:[#allocation11 + $0x90] sm:$0xff] }
  0xde   :  { %1142 = vmatprep.subr.bf16.mxu1 %v1559_v0  ;;  %v1194_v37 = vpack.c.bf16 %v474_v36, %v473_v35  ;;  %v561_v52 = vld [vmem:[#allocation11 + $0xa0] sm:$0xff]  ;;  %v562_v53 = vld [vmem:[#allocation11 + $0xa8] sm:$0xff]  ;;  %v563_v55 = vld [vmem:[#allocation11 + $0xb0] sm:$0xff] }
  0xdf   :  { %1120 = vmatpush3.bf16.msra.mxu0 %v1119_v33  ;;  %v472_v33 = vld [vmem:[#allocation8 + $0xd8] sm:$0xff]  ;;  %v565_v58 = vld [vmem:[#allocation11 + $0xc0] sm:$0xff]  ;;  %v670_v15 = vld [vmem:[#allocation17 + $0x8] sm:$0xff] }
  0xe0   :  { %1121 = vmatprep.subr.bf16.mxu0 %v1559_v0  ;;  %v1191_v34 = vpack.c.bf16 %v472_v33, %v471_v32  ;;  %v567_v61 = vld [vmem:[#allocation11 + $0xd0] sm:$0xff]  ;;  %v569_v2 = vld [vmem:[#allocation11 + $0xe0] sm:$0xff]  ;;  %v786_v27 = vld [vmem:[#allocation10 + $0x1] ss:$0 sm:$0xff] }
  0xe1   :  { %1144 = vmatpush3.bf16.msra.mxu1 %v1143_v42  ;;  %v785_v5 = vld [vmem:[#allocation13] ss:$0 sm:$0xff]  ;;  %v669_v14 = vld [vmem:[#allocation17] sm:$0xff]  ;;  %v674_v21 = vld [vmem:[#allocation17 + $0x28] sm:$0xff] }
  0xe2   :  { %1145 = vmatprep.subr.bf16.mxu1 %v1559_v0  ;;  %v1224_v17 = vpack.c.bf16 %v670_v15, %v669_v14  ;;  %v672_v18 = vld [vmem:[#allocation17 + $0x18] sm:$0xff]  ;;  %v677_v24 = vld [vmem:[#allocation17 + $0x40] sm:$0xff]  ;;  %v679_v32 = vld [vmem:[#allocation17 + $0x50] sm:$0xff] }
  0xe3   :  { %1123 = vmatpush3.bf16.msra.mxu0 %v1122_v39  ;;  %v680_v33 = vld [vmem:[#allocation17 + $0x58] sm:$0xff]  ;;  %v681_v35 = vld [vmem:[#allocation17 + $0x60] sm:$0xff]  ;;  %v682_v36 = vld [vmem:[#allocation17 + $0x68] sm:$0xff] }
  0xe4   :  { %1124 = vmatprep.subr.bf16.mxu0 %v1559_v0 }
  0xe5   :  { %1147 = vmatpush3.bf16.msra.mxu1 %v1146_v46  ;;  %v557_v46 = vld [vmem:[#allocation11 + $0x80] sm:$0xff] }
  0xe6   :  { %1148 = vmatprep.subr.bf16.mxu1 %v1559_v0 }
  0xe7   :  { %1126 = vmatpush3.bf16.msra.mxu0 %v1125_v45  ;;  %v1197_v45 = vpack.c.bf16 %v476_v44, %v475_v43 }
  0xe8   :  { %1151 = vmatprep.subr.bf16.mxu0 %v1559_v0 }
  0xe9   :  { %1150 = vmatpush3.bf16.msra.mxu1 %v1149_v50  ;;  %v560_v50 = vld [vmem:[#allocation11 + $0x98] sm:$0xff] }
  0xea   :  { %926 = vmatmul.mubr.f32.vlgmr.msra.gmra.mrb[0].mxu0 %v178_v47  ;;  %1175 = vmatprep.subr.bf16.mxu1 %v1559_v0  ;;  %v558_v47 = vld [vmem:[#allocation11 + $0x88] sm:$0xff]  ;;  %v1203_v51 = vpack.c.bf16 %v560_v50, %v559_v48 }
  0xeb   :  { %995 = vmatprep.mubr.msk.f32.mxu0 %vm1560_vm0, %v1561_v1  ;;  %1153 = vmatpush3.bf16.msra.mxu0 %v1152_v54  ;;  %v1200_v49 = vpack.c.bf16 %v558_v47, %v557_v46  ;;  %v1206_v54 = vpack.c.bf16 %v562_v53, %v561_v52  ;;  %v789_v47 = vld [vmem:[#allocation16] ss:$0 sm:$0xff] }
  0xec   :  { %1154 = vmatprep.subr.bf16.mxu0 %v1559_v0 }
  0xef   :  { %1156 = vmatpush3.bf16.msra.mxu0 %v1155_v56  ;;  %v564_v56 = vld [vmem:[#allocation11 + $0xb8] sm:$0xff] }
  0xf0   :  { %1157 = vmatprep.subr.bf16.mxu0 %v1559_v0  ;;  %v1209_v57 = vpack.c.bf16 %v564_v56, %v563_v55 }
  0xf3   :  { %1159 = vmatpush3.bf16.msra.mxu0 %v1158_v59  ;;  %v566_v59 = vld [vmem:[#allocation11 + $0xc8] sm:$0xff] }
  0xf4   :  { %1160 = vmatprep.subr.bf16.mxu0 %v1559_v0  ;;  %v1212_v60 = vpack.c.bf16 %v566_v59, %v565_v58 }
  0xf7   :  { %1162 = vmatpush3.bf16.msra.mxu0 %v1161_v62  ;;  %v568_v62 = vld [vmem:[#allocation11 + $0xd8] sm:$0xff] }
  0xf8   :  { %1163 = vmatprep.subr.bf16.mxu0 %v1559_v0  ;;  %v1215_v63 = vpack.c.bf16 %v568_v62, %v567_v61 }
  0xfb   :  { %1165 = vmatpush3.bf16.msra.mxu0 %v1164_v3  ;;  %v570_v3 = vld [vmem:[#allocation11 + $0xe8] sm:$0xff] }
  0xfc   :  { %1166 = vmatprep.subr.bf16.mxu0 %v1559_v0  ;;  %v1218_v4 = vpack.c.bf16 %v570_v3, %v569_v2 }
  0xff   :  { %1168 = vmatpush3.bf16.msra.mxu0 %v1167_v6 }
 0x100   :  { %1169 = vmatprep.subr.bf16.mxu0 %v1559_v0 }
 0x103   :  { %1171 = vmatpush3.bf16.msra.mxu0 %v1170_v9 }
 0x104   :  { %1172 = vmatprep.subr.bf16.mxu0 %v1559_v0 }
 0x107   :  { %1174 = vmatpush3.bf16.msra.mxu0 %v1173_v16  ;;  %v671_v16 = vld [vmem:[#allocation17 + $0x10] sm:$0xff] }
 0x108   :  { %1199 = vmatprep.subr.bf16.mxu0 %v1559_v0  ;;  %v1227_v19 = vpack.c.bf16 %v672_v18, %v671_v16 }
 0x1bd   :  { %v268_v11 = vpop.f32.mrb[0].mxu0 }
 0x1be   :  { %v1798_v12 = vadd.f32 %v783_v10, %v268_v11  ;;  %v927_v13 = vpop.f32.mrb[1].mxu0  ;;  %v571_v10 = vld [vmem:[#allocation11 + $0xf0] sm:$0xff]  ;;  %v572_v11 = vld [vmem:[#allocation11 + $0xf8] sm:$0xff] }
 0x1bf   :  { %v1221_v13 = vpack.c.bf16 %v572_v11, %v571_v10 }
 0x1c0   :  { %961 = vmatmul.mubr.f32.vlgmr.msra.gmra.mrb[0].mxu1 %v1798_v12 }
 0x1c1   :  { %1030 = vmatprep.mubr.msk.f32.mxu1 %vm1560_vm0, %v1561_v1  ;;  %1177 = vmatpush3.bf16.msra.mxu1 %v1176_v20  ;;  %v673_v20 = vld [vmem:[#allocation17 + $0x20] sm:$0xff] }
 0x1c2   :  { %1178 = vmatprep.subr.bf16.mxu1 %v1559_v0 }
 0x1c5   :  { %1180 = vmatpush3.bf16.msra.mxu1 %v1179_v22  ;;  %v676_v22 = vld [vmem:[#allocation17 + $0x38] sm:$0xff] }
 0x1c6   :  { %1181 = vmatprep.subr.bf16.mxu1 %v1559_v0 }
 0x1c9   :  { %1183 = vmatpush3.bf16.msra.mxu1 %v1182_v25  ;;  %v678_v25 = vld [vmem:[#allocation17 + $0x48] sm:$0xff] }
 0x1ca   :  { %1184 = vmatprep.subr.bf16.mxu1 %v1559_v0  ;;  %v1236_v26 = vpack.c.bf16 %v678_v25, %v677_v24 }
 0x1cd   :  { %1186 = vmatpush3.bf16.msra.mxu1 %v1185_v28 }
 0x1ce   :  { %1187 = vmatprep.subr.bf16.mxu1 %v1559_v0 }
 0x1d1   :  { %1189 = vmatpush3.bf16.msra.mxu1 %v1188_v31 }
 0x1d2   :  { %1190 = vmatprep.subr.bf16.mxu1 %v1559_v0 }
 0x1d5   :  { %1192 = vmatpush3.bf16.msra.mxu1 %v1191_v34  ;;  %v1239_v34 = vpack.c.bf16 %v680_v33, %v679_v32 }
 0x1d6   :  { %1193 = vmatprep.subr.bf16.mxu1 %v1559_v0 }
 0x1d9   :  { %1195 = vmatpush3.bf16.msra.mxu1 %v1194_v37  ;;  %v1242_v37 = vpack.c.bf16 %v682_v36, %v681_v35 }
 0x1da   :  { %1196 = vmatprep.subr.bf16.mxu1 %v1559_v0 }
 0x1dd   :  { %1198 = vmatpush3.bf16.msra.mxu1 %v1197_v45  ;;  %v788_v45 = vld [vmem:[#allocation14] ss:$0 sm:$0xff] }
 0x1de   :  { %1223 = vmatprep.subr.bf16.mxu1 %v1559_v0 }
 0x293   :  { %v361_v39 = vpop.f32.mrb[0].mxu1 }
 0x294   :  { %v362_v40 = vadd.f32 %v784_v38, %v361_v39  ;;  %v962_v41 = vpop.f32.mrb[1].mxu1  ;;  %v683_v38 = vld [vmem:[#allocation17 + $0x70] sm:$0xff]  ;;  %v684_v39 = vld [vmem:[#allocation17 + $0x78] sm:$0xff] }
 0x295   :  { %v787_v41 = vld [vmem:[#allocation13 + $0x1] ss:$0 sm:$0xff] }
 0x296   :  { %v365_v42 = vmax.f32 %v362_v40, 0.0  ;;  %v1245_v40 = vpack.c.bf16 %v684_v39, %v683_v38 }
 0x298   :  { %996 = vmatmul.mubr.f32.vlgmr.msra.gmra.mrb[2].mxu0 %v365_v42 }
 0x299   :  { %1065 = vmatprep.mubr.msk.f32.mxu0 %vm1560_vm0, %v1561_v1  ;;  %1201 = vmatpush3.bf16.msra.mxu0 %v1200_v49 }
 0x29a   :  { %1202 = vmatprep.subr.bf16.mxu0 %v1559_v0 }
 0x29d   :  { %1204 = vmatpush3.bf16.msra.mxu0 %v1203_v51  ;;  %v790_v51 = vld [vmem:[#allocation19] ss:$0 sm:$0xff] }
 0x29e   :  { %1205 = vmatprep.subr.bf16.mxu0 %v1559_v0 }
 0x2a1   :  { %1207 = vmatpush3.bf16.msra.mxu0 %v1206_v54 }
 0x2a2   :  { %1208 = vmatprep.subr.bf16.mxu0 %v1559_v0 }
 0x2a5   :  { %1210 = vmatpush3.bf16.msra.mxu0 %v1209_v57 }
 0x2a6   :  { %1211 = vmatprep.subr.bf16.mxu0 %v1559_v0 }
 0x2a9   :  { %1213 = vmatpush3.bf16.msra.mxu0 %v1212_v60 }
 0x2aa   :  { %1214 = vmatprep.subr.bf16.mxu0 %v1559_v0 }
 0x2ad   :  { %1216 = vmatpush3.bf16.msra.mxu0 %v1215_v63 }
 0x2ae   :  { %1217 = vmatprep.subr.bf16.mxu0 %v1559_v0 }
 0x2b1   :  { %1219 = vmatpush3.bf16.msra.mxu0 %v1218_v4 }
 0x2b2   :  { %1220 = vmatprep.subr.bf16.mxu0 %v1559_v0 }
 0x2b5   :  { %1222 = vmatpush3.bf16.msra.mxu0 %v1221_v13 }
 0x36b   :  { %v455_v6 = vpop.f32.mrb[2].mxu0 }
 0x36c   :  { %v456_v7 = vadd.f32 %v785_v5, %v455_v6  ;;  %v997_v8 = vpop.f32.mrb[3].mxu0 }
 0x36e   :  { %v459_v9 = vadd.f32 %v456_v7, %v1798_v12  ;;  %v1230_v12 = vpack.c.bf16 %v674_v21, %v673_v20 }
 0x370   :  { %1031 = vmatmul.mubr.f32.vlgmr.msra.gmra.mrb[2].mxu1 %v459_v9 }
 0x371   :  { %1100 = vmatprep.mubr.msk.f32.mxu1 %vm1560_vm0, %v1561_v1  ;;  %1225 = vmatpush3.bf16.msra.mxu1 %v1224_v17  ;;  %v675_v1 = vld [vmem:[#allocation17 + $0x30] sm:$0xff] }
 0x372   :  { %1226 = vmatprep.subr.bf16.mxu1 %v1559_v0  ;;  %v1233_v23 = vpack.c.bf16 %v676_v22, %v675_v1 }
 0x375   :  { %1228 = vmatpush3.bf16.msra.mxu1 %v1227_v19 }
 0x376   :  { %1229 = vmatprep.subr.bf16.mxu1 %v1559_v0 }
 0x379   :  { %1231 = vmatpush3.bf16.msra.mxu1 %v1230_v12 }
 0x37a   :  { %1232 = vmatprep.subr.bf16.mxu1 %v1559_v0 }
 0x37d   :  { %1234 = vmatpush3.bf16.msra.mxu1 %v1233_v23 }
 0x37e   :  { %1235 = vmatprep.subr.bf16.mxu1 %v1559_v0 }
 0x381   :  { %1237 = vmatpush3.bf16.msra.mxu1 %v1236_v26 }
 0x382   :  { %1238 = vmatprep.subr.bf16.mxu1 %v1559_v0 }
 0x385   :  { %1240 = vmatpush3.bf16.msra.mxu1 %v1239_v34 }
 0x386   :  { %1241 = vmatprep.subr.bf16.mxu1 %v1559_v0 }
 0x389   :  { %1243 = vmatpush3.bf16.msra.mxu1 %v1242_v37 }
 0x38a   :  { %1244 = vmatprep.subr.bf16.mxu1 %v1559_v0 }
 0x38d   :  { %1246 = vmatpush3.bf16.msra.mxu1 %v1245_v40 }
 0x443   :  { %v551_v28 = vpop.f32.mrb[2].mxu1 }
 0x444   :  { %v552_v29 = vadd.f32 %v786_v27, %v551_v28  ;;  %v1032_v30 = vpop.f32.mrb[3].mxu1 }
 0x446   :  { %v555_v31 = vmax.f32 %v552_v29, 0.0 }
 0x448   :  { %1066 = vmatmul.mubr.f32.vlgmr.msra.gmra.mrb[4].mxu0 %v555_v31 }
 0x51b   :  { %v647_v42 = vpop.f32.mrb[4].mxu0 }
 0x51c   :  { %v648_v43 = vadd.f32 %v787_v41, %v647_v42  ;;  %v1067_v44 = vpop.f32.mrb[5].mxu0 }
 0x51e   :  { %v651_v46 = vadd.f32 %v648_v43, %v459_v9 }
 0x520   :  { %v659_v48 = vmul.f32 %v788_v45, %v651_v46 }
 0x522   :  { %v667_v49 = vadd.f32 %v789_v47, %v659_v48 }
 0x524   :  { %v668_v50 = vmax.f32 %v667_v49, 0.0 }
 0x526   :  { %1101 = vmatmul.mubr.f32.vlgmr.msra.gmra.mrb[4].mxu1 %v668_v50 }
 0x5f9   :  { %v758_v52 = vpop.f32.mrb[4].mxu1 }
 0x5fa   :  { %v759_v0 = vadd.f32 %v790_v51, %v758_v52  ;;  %v1102_v53 = vpop.f32.mrb[5].mxu1 }
 0x5fc   :  { %762 = vst [vmem:[#allocation20] sm:$0xff] %v759_v0 }
 0x5fd   :  { %1519 = shalt.err (!%p1516_p8)
}
 0x5fe   :  { %s1520_s1 = scalar_lea.hbm %s1854_s11, 128 }
 0x5ff   :  { %p1521_p9 = scmp.ne.s32.totalorder %s1854_s11, %s1520_s1  ;;  %p1524_p10 = scmp.lt.u32.totalorder %s1520_s1, %s1854_s11 }
 0x601   :  { %p1526_p11 = pnand %p1524_p10, %p1521_p9 }
 0x603   :  { %1529 = shalt.err (!%p1526_p11)
}
 0x604   :  { %772 = dma.vmem_to_hbm [thread:$0]  %s770_s7, 128, %s1854_s11, [#allocation4]  }
 0x605   :  { %1542 = dma.done.wait [#allocation4], 128  }
 0x606   :  { %1543 = vsyncadd [#allocation4], 4294967168 }
 0x607   :  { %776 = vsyncpa [#allocation3], 1 }
 0x608   :  { %777 = vsyncpa [#allocation6], 1 }
 0x609   :  { %778 = vsyncpa [#allocation9], 1 }
 0x60a   :  { %779 = vsyncpa [#allocation12], 1 }
 0x60b   :  { %780 = vsyncpa [#allocation15], 1 }
 0x60c   :  { %781 = vsyncpa [#allocation18], 1 }
 0x60d   :  { %782 = vsyncpa [#allocation4], 1 }

</bundles_post_ra>
